<compile_context>
chip_gen: v6e
topology: v6e:2x2x1
jax: 0.10.0
libtpu: 0.0.40
codegen_flags: <defaults>
</compile_context>

<pallas_src>
import functools

import jax
import jax.numpy as jnp
from jax.experimental import pallas as pl
from jax.experimental.pallas import tpu as pltpu

_LANES = 128
_MAX_BLOCK_ROWS = 4096      # 2 MiB per f32 input block; 3 streams x 2 bufs <= 12 MiB (fits v5e)
_MIN_FAST_PATH_ROWS = 512   # >=512-row blocks already hit ~85% of HBM roofline


def _round_up(a, b):
    return (a + b - 1) // b * b


def _min_sublanes(dtype):
    return {4: 8, 2: 16, 1: 32}.get(jnp.dtype(dtype).itemsize, 8)


# --------------------------------------------------------------------------
# Per-tile math
# --------------------------------------------------------------------------
def _focal_loss_tile(x, t, *, alpha, gamma):
    """Elementwise focal loss on one (rows, 128) tile (computed in f32)."""
    x = x.astype(jnp.float32)
    t = t.astype(jnp.float32)
    s = jnp.exp(-jnp.abs(x))                       # single EUP exp, reused below
    # Numerically stable binary_cross_entropy_with_logits (reduction='none').
    bce = jnp.maximum(x, 0.0) - x * t + jnp.log1p(s)
    # probs = sigmoid(x) without a second exp (one select + one divide).
    probs = jnp.where(x >= 0.0, 1.0, s) / (1.0 + s)
    # p_t = probs*t + (1-probs)*(1-t)  — exact, valid for soft targets too.
    p_t = (1.0 - t) + (2.0 * t - 1.0) * probs
    one_minus_pt = jnp.maximum(1.0 - p_t, 0.0)     # guard pow/rounding edge cases
    g = float(gamma)
    if g.is_integer() and 0.0 <= g <= 8.0:
        gi = int(g)
        if gi == 0:
            mod = jnp.ones_like(one_minus_pt)
        else:
            mod = one_minus_pt
            for _ in range(gi - 1):                # gamma=2 -> one VPU multiply, no EUP
                mod = mod * one_minus_pt
    else:
        mod = jnp.power(one_minus_pt, g)           # non-integer gamma fallback
    alpha_t = (1.0 - alpha) + (2.0 * alpha - 1.0) * t
    return alpha_t * mod * bce


# --------------------------------------------------------------------------
# Kernels
# --------------------------------------------------------------------------
def _focal_none_kernel(x_ref, t_ref, out_ref, *, alpha, gamma):
    out_ref[...] = _focal_loss_tile(
        x_ref[...], t_ref[...], alpha=alpha, gamma=gamma
    ).astype(out_ref.dtype)


def _focal_reduce_kernel(x_ref, t_ref, acc_ref, *, alpha, gamma, block_rows,
                         blocks_per_core, batch, need_mask):
    i = pl.program_id(1)                           # "arbitrary" (reduction) axis

    @pl.when(i == 0)
    def _init():
        acc_ref[...] = jnp.zeros_like(acc_ref)

    loss = _focal_loss_tile(x_ref[...], t_ref[...], alpha=alpha, gamma=gamma)

    if need_mask:
        # Only reached for gamma <= 0 (sentinel padding already yields exactly
        # zero loss for gamma > 0, so the per-block mask is normally elided).
        blk = pl.program_id(0) * blocks_per_core + i
        r = jax.lax.broadcasted_iota(jnp.int32, loss.shape, 0)
        l = jax.lax.broadcasted_iota(jnp.int32, loss.shape, 1)
        gidx = (blk * block_rows + r) * _LANES + l
        loss = jnp.where(gidx < batch, loss, 0.0)

    # Per-step vreg-wise partial adds into an (8,128) accumulator.  The single
    # cross-lane/sublane reduce happens exactly once, in the wrapper.
    acc_ref[...] += loss.reshape(-1, 8, _LANES).sum(axis=0)


# --------------------------------------------------------------------------
# Reference (pure JAX) — also the tiny-batch fallback
# --------------------------------------------------------------------------
def _focal_loss_ref(pred_scores, targets, alpha=0.25, gamma=2.0, reduction="mean"):
    x = pred_scores.astype(jnp.float32)
    t = targets.astype(jnp.float32)
    probs = jax.nn.sigmoid(x)
    bce = jnp.maximum(x, 0.0) - x * t + jnp.log1p(jnp.exp(-jnp.abs(x)))
    p_t = probs * t + (1.0 - probs) * (1.0 - t)
    alpha_t = alpha * t + (1.0 - alpha) * (1.0 - t)
    loss = alpha_t * (1.0 - p_t) ** gamma * bce
    if reduction == "none":
        return loss.astype(pred_scores.dtype)
    if reduction == "sum":
        return loss.sum().astype(pred_scores.dtype)
    return loss.mean().astype(pred_scores.dtype)


# --------------------------------------------------------------------------
# Layout selection
# --------------------------------------------------------------------------
def _choose_layout(batch, rows, desired_rows, sub):
    """Returns (rows_padded, block_rows, used_padded_path)."""
    desired = max(_round_up(min(desired_rows, _MAX_BLOCK_ROWS), sub), sub)
    # Fast path: 128-aligned batch whose row count has a big-enough divisor —
    # no jnp.pad copy at all; the reshape to (rows, 128) is a bitcast.
    if batch == rows * _LANES and rows % sub == 0:
        cap = min(desired, rows)
        cap -= cap % sub
        br = sub
        for cand in range(cap, 0, -sub):
            if rows % cand == 0:
                br = cand
                break
        if br >= min(_MIN_FAST_PATH_ROWS, cap):
            return rows, br, False
    block = min(desired, _round_up(rows, sub))
    return _round_up(rows, block), block, True


# --------------------------------------------------------------------------
# Public wrapper (FocalLoss.forward)
# --------------------------------------------------------------------------
def focal_loss(pred_scores, targets, *, alpha=0.25, gamma=2.0, reduction="mean",
               block_rows=2048, min_pallas_batch=0):
    """Pallas implementation of FocalLoss.forward.

    pred_scores: (batch,) float logits
    targets:     (batch,) labels (binary or soft, in [0, 1])
    Returns scalar for 'mean'/'sum', (batch,) array for 'none'.

    min_pallas_batch: batches smaller than this use the fused pure-JAX path
    (in production set this to ~16K-64K; default 0 so the Pallas path is
    always exercised here).
    """
    if reduction not in ("none", "mean", "sum"):
        raise ValueError(f"Unsupported reduction: {reduction}")
    assert pred_scores.shape == targets.shape
    (batch,) = pred_scores.shape

    if batch < min_pallas_batch:
        return _focal_loss_ref(pred_scores, targets, alpha, gamma, reduction)

    out_dtype = pred_scores.dtype
    rows = pl.cdiv(batch, _LANES)
    sub = max(_min_sublanes(pred_scores.dtype), _min_sublanes(targets.dtype))
    rows_padded, block, padded_path = _choose_layout(batch, rows, block_rows, sub)
    num_blocks = rows_padded // block

    # mean/sum path: keep the block count even (costs at most one extra
    # zero-loss sentinel block) so the grid splits 2-way across v7x's cores.
    if reduction != "none" and padded_path and num_blocks > 1 and num_blocks % 2:
        num_blocks += 1
        rows_padded += block

    pad = rows_padded * _LANES - batch
    if pad:
        # Sentinel padding: focal loss of (logit=+30, target=1) is exactly 0
        # in f32 for gamma > 0, so the reduce kernel needs no masking.
        x2d = jnp.pad(pred_scores, (0, pad), constant_values=30.0)
        t2d = jnp.pad(targets, (0, pad), constant_values=1.0)
    else:
        x2d, t2d = pred_scores, targets
    x2d = x2d.reshape(rows_padded, _LANES)
    t2d = t2d.reshape(rows_padded, _LANES)

    if reduction == "none":
        kernel = functools.partial(
            _focal_none_kernel, alpha=float(alpha), gamma=float(gamma))
        out = pl.pallas_call(
            kernel,
            out_shape=jax.ShapeDtypeStruct((rows_padded, _LANES), out_dtype),
            grid=(num_blocks,),
            in_specs=[pl.BlockSpec((block, _LANES), lambda i: (i, 0)),
                      pl.BlockSpec((block, _LANES), lambda i: (i, 0))],
            out_specs=pl.BlockSpec((block, _LANES), lambda i: (i, 0)),
            compiler_params=pltpu.CompilerParams(
                dimension_semantics=("parallel",)),
        )(x2d, t2d)
        return out.reshape(-1)[:batch]

    # ---- mean / sum: per-core (8,128) f32 accumulators ----
    n_par = 2 if (num_blocks >= 2 and num_blocks % 2 == 0) else 1
    blocks_per_core = num_blocks // n_par
    need_mask = (pad > 0) and not (float(gamma) > 0.0)

    kernel = functools.partial(
        _focal_reduce_kernel,
        alpha=float(alpha), gamma=float(gamma), block_rows=block,
        blocks_per_core=blocks_per_core, batch=batch, need_mask=need_mask)
    partials = pl.pallas_call(
        kernel,
        out_shape=jax.ShapeDtypeStruct((n_par, 8, _LANES), jnp.float32),
        grid=(n_par, blocks_per_core),
        in_specs=[
            pl.BlockSpec((block, _LANES), lambda c, i: (c * blocks_per_core + i, 0)),
            pl.BlockSpec((block, _LANES), lambda c, i: (c * blocks_per_core + i, 0)),
        ],
        out_specs=pl.BlockSpec((None, 8, _LANES), lambda c, i: (c, 0, 0)),
        compiler_params=pltpu.CompilerParams(
            dimension_semantics=("parallel", "arbitrary")),
    )(x2d, t2d)

    total = jnp.sum(partials)               # tiny (n_par*8*128) f32 reduce in XLA
    if reduction == "mean":
        total = total / float(batch)
    return total.astype(out_dtype)


if __name__ == "__main__":
    key = jax.random.PRNGKey(0)
    k1, k2, k3, k4 = jax.random.split(key, 4)

    # Small, non-multiple-of-128 batch -> exercises sentinel-padded path.
    batch = 300
    pred_scores = jax.random.normal(k1, (batch,), dtype=jnp.float32) * 2.0
    targets = (jax.random.uniform(k2, (batch,)) > 0.7).astype(jnp.float32)

    out_mean = jax.block_until_ready(
        focal_loss(pred_scores, targets, alpha=0.25, gamma=2.0, reduction="mean"))
    ref_mean = _focal_loss_ref(pred_scores, targets, 0.25, 2.0, "mean")
    assert jnp.allclose(out_mean, ref_mean, rtol=1e-4, atol=1e-6), (out_mean, ref_mean)

    out_sum = jax.block_until_ready(
        focal_loss(pred_scores, targets, reduction="sum"))
    ref_sum = _focal_loss_ref(pred_scores, targets, 0.25, 2.0, "sum")
    assert jnp.allclose(out_sum, ref_sum, rtol=1e-4, atol=1e-5), (out_sum, ref_sum)

    out_none = jax.block_until_ready(
        focal_loss(pred_scores, targets, reduction="none"))
    ref_none = _focal_loss_ref(pred_scores, targets, 0.25, 2.0, "none")
    assert out_none.shape == (batch,)
    assert jnp.allclose(out_none, ref_none, rtol=1e-4, atol=1e-6)

    # 128-aligned batch -> exercises the no-copy fast path and the
    # (parallel, arbitrary) two-way reduce grid with small blocks.
    batch2 = 2048
    x2 = jax.random.normal(k3, (batch2,), dtype=jnp.float32) * 2.0
    t2 = (jax.random.uniform(k4, (batch2,)) > 0.5).astype(jnp.float32)
    out2 = jax.block_until_ready(
        focal_loss(x2, t2, reduction="mean", block_rows=8))
    ref2 = _focal_loss_ref(x2, t2, 0.25, 2.0, "mean")
    assert jnp.allclose(out2, ref2, rtol=1e-4, atol=1e-6), (out2, ref2)

    out2_none = jax.block_until_ready(focal_loss(x2, t2, reduction="none"))
    ref2_none = _focal_loss_ref(x2, t2, 0.25, 2.0, "none")
    assert jnp.allclose(out2_none, ref2_none, rtol=1e-4, atol=1e-6)

    print("KERNEL_OK")
</pallas_src>

<mosaic_0001>
module attributes {stable_mosaic.version = 11 : i64} {
  func.func @_focal_reduce_kernel(%arg0: i32, %arg1: i32, %arg2: memref<8x128xf32, #tpu.memory_space<vmem>>, %arg3: memref<8x128xf32, #tpu.memory_space<vmem>>, %arg4: memref<1x8x128xf32, #tpu.memory_space<vmem>>) attributes {dimension_semantics = [#tpu.dimension_semantics<parallel>, #tpu.dimension_semantics<arbitrary>], iteration_bounds = array<i64: 1, 1>, scalar_prefetch = 0 : i64, scratch_operands = 0 : i64, tpu.core_type = #tpu.core_type<tc>, window_params = [{transform_indices = @transform_0, window_bounds = array<i64: 8, 128>}, {transform_indices = @transform_1, window_bounds = array<i64: 8, 128>}, {transform_indices = @transform_2, window_bounds = array<i64: 1, 8, 128>}]} {
    %c0_i32 = arith.constant 0 : i32
    %0 = arith.cmpi eq, %arg1, %c0_i32 : i32
    %1 = arith.extui %0 : i1 to i32
    %c0_i32_0 = arith.constant 0 : i32
    %2 = arith.cmpi ne, %1, %c0_i32_0 : i32
    scf.if %2 {
      %cst_22 = arith.constant 0.000000e+00 : f32
      %49 = vector.broadcast %cst_22 : f32 to vector<8x128xf32>
      %c0_23 = arith.constant 0 : index
      %c0_24 = arith.constant 0 : index
      %c0_25 = arith.constant 0 : index
      %50 = vector.load %arg4[%c0_23, %c0_24, %c0_25] : memref<1x8x128xf32, #tpu.memory_space<vmem>>, vector<1x8x128xf32>
      %51 = vector.shape_cast %50 : vector<1x8x128xf32> to vector<8x128xf32>
      %52 = vector.shape_cast %49 : vector<8x128xf32> to vector<1x8x128xf32>
      tpu.vector_store %arg4[%c0_23, %c0_24, %c0_25], %52 {strides = array<i32>} : memref<1x8x128xf32, #tpu.memory_space<vmem>>, vector<1x8x128xf32>,
    } else {
    }
    %c0 = arith.constant 0 : index
    %c0_1 = arith.constant 0 : index
    %3 = vector.load %arg2[%c0, %c0_1] : memref<8x128xf32, #tpu.memory_space<vmem>>, vector<8x128xf32>
    %c0_2 = arith.constant 0 : index
    %c0_3 = arith.constant 0 : index
    %4 = vector.load %arg3[%c0_2, %c0_3] : memref<8x128xf32, #tpu.memory_space<vmem>>, vector<8x128xf32>
    %5 = math.absf %3 : vector<8x128xf32>
    %cst = arith.constant 0.000000e+00 : f32
    %6 = vector.broadcast %cst : f32 to vector<8x128xf32>
    %7 = arith.subf %6, %5 : vector<8x128xf32>
    %8 = math.exp %7 : vector<8x128xf32>
    %cst_4 = arith.constant 0.000000e+00 : f32
    %9 = vector.broadcast %cst_4 : f32 to vector<8x128xf32>
    %10 = arith.maximumf %3, %9 : vector<8x128xf32>
    %11 = arith.mulf %3, %4 : vector<8x128xf32>
    %12 = arith.subf %10, %11 : vector<8x128xf32>
    %13 = math.log1p %8 : vector<8x128xf32>
    %14 = arith.addf %12, %13 : vector<8x128xf32>
    %cst_5 = arith.constant 0.000000e+00 : f32
    %15 = vector.broadcast %cst_5 : f32 to vector<8x128xf32>
    %16 = arith.cmpf oge, %3, %15 : vector<8x128xf32>
    %cst_6 = arith.constant 1.000000e+00 : f32
    %17 = vector.broadcast %cst_6 : f32 to vector<8x128xf32>
    %18 = arith.select %16, %17, %8 : vector<8x128xi1>, vector<8x128xf32>
    %cst_7 = arith.constant 1.000000e+00 : f32
    %19 = vector.broadcast %cst_7 : f32 to vector<8x128xf32>
    %20 = arith.addf %19, %8 : vector<8x128xf32>
    %21 = arith.divf %18, %20 : vector<8x128xf32>
    %cst_8 = arith.constant 1.000000e+00 : f32
    %22 = vector.broadcast %cst_8 : f32 to vector<8x128xf32>
    %23 = arith.subf %22, %4 : vector<8x128xf32>
    %cst_9 = arith.constant 2.000000e+00 : f32
    %24 = vector.broadcast %cst_9 : f32 to vector<8x128xf32>
    %25 = arith.mulf %24, %4 : vector<8x128xf32>
    %cst_10 = arith.constant 1.000000e+00 : f32
    %26 = vector.broadcast %cst_10 : f32 to vector<8x128xf32>
    %27 = arith.subf %25, %26 : vector<8x128xf32>
    %28 = arith.mulf %27, %21 : vector<8x128xf32>
    %29 = arith.addf %23, %28 : vector<8x128xf32>
    %cst_11 = arith.constant 1.000000e+00 : f32
    %30 = vector.broadcast %cst_11 : f32 to vector<8x128xf32>
    %31 = arith.subf %30, %29 : vector<8x128xf32>
    %cst_12 = arith.constant 0.000000e+00 : f32
    %32 = vector.broadcast %cst_12 : f32 to vector<8x128xf32>
    %33 = arith.maximumf %31, %32 : vector<8x128xf32>
    %34 = arith.mulf %33, %33 : vector<8x128xf32>
    %cst_13 = arith.constant -5.000000e-01 : f32
    %35 = vector.broadcast %cst_13 : f32 to vector<8x128xf32>
    %36 = arith.mulf %35, %4 : vector<8x128xf32>
    %cst_14 = arith.constant 7.500000e-01 : f32
    %37 = vector.broadcast %cst_14 : f32 to vector<8x128xf32>
    %38 = arith.addf %37, %36 : vector<8x128xf32>
    %39 = arith.mulf %38, %34 : vector<8x128xf32>
    %40 = arith.mulf %39, %14 : vector<8x128xf32>
    %c0_15 = arith.constant 0 : index
    %c0_16 = arith.constant 0 : index
    %c0_17 = arith.constant 0 : index
    %41 = vector.load %arg4[%c0_15, %c0_16, %c0_17] : memref<1x8x128xf32, #tpu.memory_space<vmem>>, vector<1x8x128xf32>
    %42 = vector.shape_cast %41 : vector<1x8x128xf32> to vector<8x128xf32>
    %43 = vector.shape_cast %40 : vector<8x128xf32> to vector<1x8x128xf32>
    %cst_18 = arith.constant dense<0.000000e+00> : vector<8x128xf32>
    %44 = vector.multi_reduction <add>, %43, %cst_18 [0] : vector<1x8x128xf32> to vector<8x128xf32>
    %45 = arith.addf %42, %44 : vector<8x128xf32>
    %c0_19 = arith.constant 0 : index
    %c0_20 = arith.constant 0 : index
    %c0_21 = arith.constant 0 : index
    %46 = vector.load %arg4[%c0_19, %c0_20, %c0_21] : memref<1x8x128xf32, #tpu.memory_space<vmem>>, vector<1x8x128xf32>
    %47 = vector.shape_cast %46 : vector<1x8x128xf32> to vector<8x128xf32>
    %48 = vector.shape_cast %45 : vector<8x128xf32> to vector<1x8x128xf32>
    tpu.vector_store %arg4[%c0_19, %c0_20, %c0_21], %48 {strides = array<i32>} : memref<1x8x128xf32, #tpu.memory_space<vmem>>, vector<1x8x128xf32>,
    return
  }
  func.func @transform_0(%arg0: i32, %arg1: i32) -> (i32, i32) {
    %c1_i32 = arith.constant 1 : i32
    %0 = arith.muli %arg0, %c1_i32 : i32
    %1 = arith.addi %0, %arg1 : i32
    %c0_i32 = arith.constant 0 : i32
    %c0_i32_0 = arith.constant 0 : i32
    return %1, %c0_i32 : i32, i32
  }
  func.func @transform_1(%arg0: i32, %arg1: i32) -> (i32, i32) {
    %c1_i32 = arith.constant 1 : i32
    %0 = arith.muli %arg0, %c1_i32 : i32
    %1 = arith.addi %0, %arg1 : i32
    %c0_i32 = arith.constant 0 : i32
    %c0_i32_0 = arith.constant 0 : i32
    return %1, %c0_i32 : i32, i32
  }
  func.func @transform_2(%arg0: i32, %arg1: i32) -> (i32, i32, i32) {
    %c0_i32 = arith.constant 0 : i32
    %c0_i32_0 = arith.constant 0 : i32
    %c0_i32_1 = arith.constant 0 : i32
    return %arg0, %c0_i32, %c0_i32_0 : i32, i32, i32
  }
}

</mosaic_0001>

<bundles_post_ra>
// kernel: tpu_custom_call.1
= control target key start
LH: loop header
LB: loop body
LE: loop exit
PB: predicated region body
PF: predicated region fallthrough
CT: control target
= control target key end

     0   :  { %7 = vsyncpa [#allocation3], 0  ;;  %s209_s0 = inlined_call_operand.hbm [shape: f32[8,128], index: 0, kind: input, shape index: {}]   ;;  %s210_s1 = inlined_call_operand.hbm [shape: f32[8,128], index: 1, kind: input, shape index: {}]   ;;  %s211_s2 = inlined_call_operand.hbm [shape: f32[1,8,128], index: 2, kind: output, shape index: {}]  }
   0x1   :  { %8 = vsyncpa [#allocation6], 0 }
   0x2   :  { %9 = vsyncpa [#allocation4], 0  ;;  %s182_s9 = smov [#allocation2]   ;;  %s183_s11 = smov [#allocation5]  }
   0x3   :  { %s19_s10 = sshll.u32 %s182_s9, 4  ;;  %s32_s12 = sshll.u32 %s183_s11, 4  ;;  %s20_s10 = int_to_ptr.vmem [resolvable:$true] %s19_s10  ;;  %s33_s12 = int_to_ptr.vmem [resolvable:$true] %s32_s12 }
   0x4   :  { %s124_s13 = scalar_lea.vmem %s20_s10, 128  ;;  %p129_p1 = scmp.lt.s32.totalorder %s20_s10, %s20_s10 }
   0x5   :  { %p125_p0 = scmp.ne.s32.totalorder %s20_s10, %s124_s13  ;;  %p130_p2 = scmp.lt.s32.totalorder %s124_s13, %s124_s13 }
   0x7   :  { %p131_p3 = por %p130_p2, %p129_p1 }
   0x9   :  { %p132_p4 = pnand %p131_p3, %p125_p0 }
   0xb   :  { %135 = shalt.err (!%p132_p4)
}
   0xc   :  { %22 = dma.hbm_to_vmem [thread:$0]  %s209_s0, 128, %s20_s10, [#allocation3]  }
   0xd   :  { %s144_s16 = scalar_lea.vmem %s33_s12, 128  ;;  %p149_p6 = scmp.lt.s32.totalorder %s33_s12, %s33_s12 }
   0xe   :  { %p145_p5 = scmp.ne.s32.totalorder %s33_s12, %s144_s16  ;;  %p150_p7 = scmp.lt.s32.totalorder %s144_s16, %s144_s16 }
  0x10   :  { %p151_p8 = por %p150_p7, %p149_p6 }
  0x12   :  { %p152_p9 = pnand %p151_p8, %p145_p5 }
  0x14   :  { %155 = shalt.err (!%p152_p9)
}
  0x15   :  { %35 = dma.hbm_to_vmem [thread:$0]  %s210_s1, 128, %s33_s12, [#allocation6]  }
  0x16   :  { %176 = dma.done.wait [#allocation3], 128  }
  0x17   :  { %177 = vsyncadd [#allocation3], 4294967168 }
  0x18   :  { %178 = dma.done.wait [#allocation6], 128  }
  0x19   :  { %179 = vsyncadd [#allocation6], 4294967168  ;;  %v49_v0 = vld [vmem:[#allocation2] sm:$0xff]  ;;  %v50_v6 = vld [vmem:[#allocation5] sm:$0xff]  ;;  %s184_s0 = smov [#allocation7]  }
  0x1a   :  { %v51_v1 = vand.u32 2147483647, %v49_v0  ;;  %vm68_vm0 = vcmp.ge.f32.partialorder %v49_v0, 0.0  ;;  %v74_v7 = vmul.f32 2.0, %v50_v6  ;;  %v73_v16 = vsub.f32 1.0, %v50_v6  ;;  %s95_s1 = sshll.u32 %s184_s0, 4  ;;  %s96_s1 = int_to_ptr.vmem [resolvable:$true] %s95_s1 }
  0x1b   :  { %v55_v17 = vmax.f32 %v49_v0, 0.0  ;;  %v56_v18 = vmul.f32 %v50_v6, %v49_v0  ;;  %v81_v23 = vmul.f32 -0.5, %v50_v6  ;;  %s156_s19 = scalar_lea.vmem %s96_s1, 128  ;;  %p161_p11 = scmp.lt.s32.totalorder %s96_s1, %s96_s1 }
  0x1c   :  { %v52_v2 = vsub.f32 0.0, %v51_v1  ;;  %v105_v10 = vadd.f32 -1.0, %v74_v7  ;;  %p157_p10 = scmp.ne.s32.totalorder %s96_s1, %s156_s19  ;;  %p162_p12 = scmp.lt.s32.totalorder %s156_s19, %s156_s19 }
  0x1d   :  { %v57_v24 = vsub.f32 %v55_v17, %v56_v18  ;;  %v82_v28 = vadd.f32 0.75, %v81_v23 }
  0x1e   :  { %v53_v3 = vmul.f32 1.442695, %v52_v2  ;;  %p163_p13 = por %p162_p12, %p161_p11 }
  0x20   :  { %110 = vpow2.f32 %v53_v3  ;;  %p164_p0 = pnand %p163_p13, %p157_p10 }
  0x2d   :  { %v111_v4 = vpop.eup %110 }
  0x2e   :  { %v58_v5 = vadd.f32 1.0, %v111_v4  ;;  %v61_v8 = vmul.f32 -0.5, %v111_v4  ;;  %v69_v9 = vsel %vm68_vm0, 1.0, %v111_v4  ;;  %v64_v14 = vand.u32 2147483647, %v111_v4 }
  0x30   :  { %112 = vrcp.f32 %v58_v5  ;;  %v62_v12 = vadd.f32 1.0, %v61_v8  ;;  %vm65_vm1 = vcmp.lt.f32.partialorder %v64_v14, 0.0004427343 }
  0x31   :  { %114 = vlog2.f32 %v58_v5 }
  0x32   :  { %v63_v21 = vmul.f32 %v111_v4, %v62_v12 }
  0x3d   :  { %v113_v11 = vpop.eup %112 }
  0x3e   :  { %v115_v13 = vpop.eup %114  ;;  %v72_v15 = vmul.f32 %v113_v11, %v69_v9 }
  0x3f   :  { %v60_v20 = vmul.f32 0.6931472, %v115_v13 }
  0x40   :  { %v76_v19 = vmul.f32 %v105_v10, %v72_v15 }
  0x41   :  { %v66_v26 = vsel %vm65_vm1, %v63_v21, %v60_v20 }
  0x42   :  { %v77_v22 = vadd.f32 %v76_v19, %v73_v16  ;;  %v67_v29 = vadd.f32 %v66_v26, %v57_v24 }
  0x44   :  { %v78_v25 = vsub.f32 1.0, %v77_v22 }
  0x46   :  { %v79_v27 = vmax.f32 %v78_v25, 0.0 }
  0x48   :  { %v80_v30 = vmul.f32 %v79_v27, %v79_v27 }
  0x4a   :  { %v83_v31 = vmul.f32 %v82_v28, %v80_v30 }
  0x4c   :  { %v84_v32 = vmul.f32 %v83_v31, %v67_v29 }
  0x4e   :  { %88 = vst [vmem:[#allocation7] sm:$0xff] %v84_v32 }
  0x4f   :  { %167 = shalt.err (!%p164_p0)
}
  0x50   :  { %98 = dma.vmem_to_hbm [thread:$0]  %s96_s1, 128, %s211_s2, [#allocation4]  }
  0x51   :  { %180 = dma.done.wait [#allocation4], 128  }
  0x52   :  { %181 = vsyncadd [#allocation4], 4294967168 }
  0x53   :  { %102 = vsyncpa [#allocation3], 1 }
  0x54   :  { %103 = vsyncpa [#allocation6], 1 }
  0x55   :  { %104 = vsyncpa [#allocation4], 1 }

</bundles_post_ra>
